<compile_context>
chip_gen: v6e
topology: v6e:2x2x1
jax: 0.10.0
libtpu: 0.0.40
codegen_flags: <defaults>
</compile_context>

<pallas_src>
import math
from functools import partial

import jax
import jax.numpy as jnp
from jax.experimental import pallas as pl
from jax.experimental.pallas import tpu as pltpu

_MASK_VALUE = -1e30  # finite stand-in for -inf (exp underflows to exactly 0)


# ----------------------------------------------------------------------------
# Tiled linear kernel: y = x @ w + b   (w already transposed to (K, N))
# ----------------------------------------------------------------------------
def _linear_kernel(x_ref, w_ref, b_ref, o_ref, acc_ref):
    k = pl.program_id(2)

    @pl.when(k == 0)
    def _():
        acc_ref[...] = jnp.zeros(acc_ref.shape, acc_ref.dtype)

    acc_ref[...] += jnp.dot(x_ref[...], w_ref[...],
                            preferred_element_type=jnp.float32)

    @pl.when(k == pl.num_programs(2) - 1)
    def _():
        o_ref[...] = (acc_ref[...] + b_ref[...]).astype(o_ref.dtype)


def _pick_tile(dim, cap):
    """Largest tile <= cap that divides dim (full dim if it already fits)."""
    if dim <= cap:
        return dim
    t = cap
    while t > 1 and dim % t != 0:
        t //= 2
    return t if (t >= 1 and dim % t == 0) else dim


def pallas_linear(x, w, b, *, tm_cap=256, tn_cap=256, tk_cap=512):
    """x: (M, K); w: (N, K) torch layout; b: (N,) -> (M, N)."""
    M, K = x.shape
    N = w.shape[0]
    wt = w.T                      # (K, N) -- one-time XLA transpose of weights
    b2 = b.reshape(1, N)

    tm = _pick_tile(M, tm_cap)
    tn = _pick_tile(N, tn_cap)
    tk = _pick_tile(K, tk_cap)
    grid = (M // tm, N // tn, K // tk)

    return pl.pallas_call(
        _linear_kernel,
        out_shape=jax.ShapeDtypeStruct((M, N), x.dtype),
        grid_spec=pltpu.PrefetchScalarGridSpec(
            num_scalar_prefetch=0,
            grid=grid,
            in_specs=[
                pl.BlockSpec((tm, tk), lambda i, j, k: (i, k)),
                pl.BlockSpec((tk, tn), lambda i, j, k: (k, j)),
                pl.BlockSpec((1, tn), lambda i, j, k: (0, j)),
            ],
            out_specs=pl.BlockSpec((tm, tn), lambda i, j, k: (i, j)),
            scratch_shapes=[pltpu.VMEM((tm, tn), jnp.float32)],
        ),
        compiler_params=pltpu.CompilerParams(
            dimension_semantics=("parallel", "parallel", "arbitrary")),
    )(x, wt, b2)


# ----------------------------------------------------------------------------
# Head-batched flash-attention core over grid (B, q_blocks, kv_blocks)
# ----------------------------------------------------------------------------
def _attn_kernel(q_ref, k_ref, v_ref, bias_ref, o_ref,
                 m_sc, l_sc, acc_sc):
    ki = pl.program_id(2)

    @pl.when(ki == 0)
    def _():
        m_sc[...] = jnp.full(m_sc.shape, -jnp.inf, dtype=m_sc.dtype)
        l_sc[...] = jnp.zeros(l_sc.shape, l_sc.dtype)
        acc_sc[...] = jnp.zeros(acc_sc.shape, acc_sc.dtype)

    q = q_ref[...]                                    # (H, tq, Dh), pre-scaled
    k = k_ref[...]                                    # (H, tk, Dh)
    # Batched (per-head) scores; jnp.dot is not batched -> einsum.
    s = jnp.einsum("hqd,hkd->hqk", q, k,
                   preferred_element_type=jnp.float32)
    s = s + bias_ref[...][None, :, :]                 # broadcast (tq,tk) over H

    m_prev = m_sc[...]                                # (H, tq, 1)
    m_new = jnp.maximum(m_prev, s.max(axis=-1, keepdims=True))
    alpha = jnp.exp(m_prev - m_new)
    p = jnp.exp(s - m_new)                            # (H, tq, tk)
    l_sc[...] = alpha * l_sc[...] + p.sum(axis=-1, keepdims=True)
    acc_sc[...] = alpha * acc_sc[...] + jnp.einsum(
        "hqk,hkd->hqd", p.astype(v_ref.dtype), v_ref[...],
        preferred_element_type=jnp.float32)
    m_sc[...] = m_new

    @pl.when(ki == pl.num_programs(2) - 1)
    def _():
        o_ref[...] = (acc_sc[...] / l_sc[...]).astype(o_ref.dtype)


def pallas_mha(Q, K, V, bias, *, tq_cap=128, tk_cap=128):
    """Q,K,V: (B, H, L, Dh); bias: (B, Lq, Lk) additive -> (B, H, Lq, Dh)."""
    B, H, L_q, Dh = Q.shape
    L_k = K.shape[2]
    tq = _pick_tile(L_q, tq_cap)
    tk = _pick_tile(L_k, tk_cap)
    grid = (B, L_q // tq, L_k // tk)

    return pl.pallas_call(
        _attn_kernel,
        out_shape=jax.ShapeDtypeStruct((B, H, L_q, Dh), Q.dtype),
        grid_spec=pltpu.PrefetchScalarGridSpec(
            num_scalar_prefetch=0,
            grid=grid,
            in_specs=[
                pl.BlockSpec((None, H, tq, Dh),
                             lambda b, qi, ki: (b, 0, qi, 0)),
                pl.BlockSpec((None, H, tk, Dh),
                             lambda b, qi, ki: (b, 0, ki, 0)),
                pl.BlockSpec((None, H, tk, Dh),
                             lambda b, qi, ki: (b, 0, ki, 0)),
                pl.BlockSpec((None, tq, tk),
                             lambda b, qi, ki: (b, qi, ki)),
            ],
            out_specs=pl.BlockSpec((None, H, tq, Dh),
                                   lambda b, qi, ki: (b, 0, qi, 0)),
            scratch_shapes=[
                pltpu.VMEM((H, tq, 1), jnp.float32),   # running max
                pltpu.VMEM((H, tq, 1), jnp.float32),   # running denom
                pltpu.VMEM((H, tq, Dh), jnp.float32),  # running numerator
            ],
        ),
        compiler_params=pltpu.CompilerParams(
            dimension_semantics=("parallel", "parallel", "arbitrary")),
    )(Q, K, V, bias)


# ----------------------------------------------------------------------------
# Full BartAttention forward
# ----------------------------------------------------------------------------
def bart_attention(query, key, value, params, n_heads,
                   attn_mask=None, key_padding_mask=None):
    """query/key/value: (L, B, d_model) like the torch module. Returns same."""
    L_q, B, d_model = query.shape
    L_k = key.shape[0]
    assert d_model % n_heads == 0
    Dh = d_model // n_heads
    scale = 1.0 / math.sqrt(Dh)

    # Fold the score scale into the Q projection (tiny weight-side op) so the
    # attention inner loop does no per-element scaling.
    wq = params["wq"] * scale
    bq = params["bq"] * scale

    # Projections on flattened (L*B, d_model).
    q2 = pallas_linear(query.reshape(L_q * B, d_model), wq, bq)
    k2 = pallas_linear(key.reshape(L_k * B, d_model), params["wk"], params["bk"])
    v2 = pallas_linear(value.reshape(L_k * B, d_model), params["wv"], params["bv"])

    # (L, B, H, Dh) -> (B, H, L, Dh)
    Q = q2.reshape(L_q, B, n_heads, Dh).transpose(1, 2, 0, 3)
    K = k2.reshape(L_k, B, n_heads, Dh).transpose(1, 2, 0, 3)
    V = v2.reshape(L_k, B, n_heads, Dh).transpose(1, 2, 0, 3)

    # Combined additive bias (B, Lq, Lk): padding -> -1e30, plus attn_mask.
    bias = jnp.zeros((B, L_q, L_k), jnp.float32)
    if key_padding_mask is not None:
        bias = jnp.where(key_padding_mask[:, None, :], _MASK_VALUE, bias)
    if attn_mask is not None:
        bias = bias + attn_mask.astype(jnp.float32)

    attn = pallas_mha(Q, K, V, bias)                   # (B, H, Lq, Dh)

    # (B, H, Lq, Dh) -> (Lq, B, d_model)  (single transpose + reshape)
    attn = attn.transpose(2, 0, 1, 3).reshape(L_q, B, d_model)

    out = pallas_linear(attn.reshape(L_q * B, d_model),
                        params["wo"], params["bo"])
    return out.reshape(L_q, B, d_model)


# ----------------------------------------------------------------------------
# Pure-JAX reference (matches the PyTorch module in eval mode)
# ----------------------------------------------------------------------------
def _ref_bart_attention(query, key, value, params, n_heads,
                        attn_mask=None, key_padding_mask=None):
    L_q, B, d_model = query.shape
    L_k = key.shape[0]
    Dh = d_model // n_heads
    hp = jax.lax.Precision.HIGHEST

    def lin(x, w, b):
        return jnp.einsum("lbd,od->lbo", x, w, precision=hp) + b

    Q = lin(query, params["wq"], params["bq"]).reshape(L_q, B, n_heads, Dh).transpose(1, 2, 0, 3)
    K = lin(key, params["wk"], params["bk"]).reshape(L_k, B, n_heads, Dh).transpose(1, 2, 0, 3)
    V = lin(value, params["wv"], params["bv"]).reshape(L_k, B, n_heads, Dh).transpose(1, 2, 0, 3)

    w = jnp.einsum("bhqd,bhkd->bhqk", Q, K, precision=hp) / math.sqrt(Dh)
    if key_padding_mask is not None:
        w = jnp.where(key_padding_mask[:, None, None, :], -jnp.inf, w)
    if attn_mask is not None:
        w = w + attn_mask
    p = jax.nn.softmax(w, axis=-1)
    o = jnp.einsum("bhqk,bhkd->bhqd", p, V, precision=hp)
    o = o.transpose(0, 2, 1, 3).reshape(B, L_q, d_model).transpose(1, 0, 2)
    return jnp.einsum("lbd,od->lbo", o, params["wo"], precision=hp) + params["bo"]


if __name__ == "__main__":
    B, L, d_model, n_heads = 2, 8, 32, 4

    root = jax.random.PRNGKey(0)
    ks = jax.random.split(root, 11)

    def init_linear(kw, kb, out_dim, in_dim):
        w = 0.1 * jax.random.normal(kw, (out_dim, in_dim), jnp.float32)
        b = 0.1 * jax.random.normal(kb, (out_dim,), jnp.float32)
        return w, b

    wq, bq = init_linear(ks[0], ks[1], d_model, d_model)
    wk, bk = init_linear(ks[2], ks[3], d_model, d_model)
    wv, bv = init_linear(ks[4], ks[5], d_model, d_model)
    wo, bo = init_linear(ks[6], ks[7], d_model, d_model)
    params = dict(wq=wq, bq=bq, wk=wk, bk=bk, wv=wv, bv=bv, wo=wo, bo=bo)

    query = jax.random.normal(ks[8], (L, B, d_model), jnp.float32)
    key_in = jax.random.normal(ks[9], (L, B, d_model), jnp.float32)
    value = jax.random.normal(ks[10], (L, B, d_model), jnp.float32)

    # key_padding_mask: True = padded key (mask out). Pad last 2 keys of batch 0.
    key_padding_mask = jnp.zeros((B, L), dtype=bool).at[0, L - 2:].set(True)
    # attn_mask: additive causal mask (Lq, Lk).
    attn_mask = jnp.triu(jnp.full((L, L), -1e9, dtype=jnp.float32), k=1)

    fwd = jax.jit(partial(bart_attention, n_heads=n_heads))
    out = fwd(query, key_in, value, params,
              attn_mask=attn_mask, key_padding_mask=key_padding_mask)
    out = jax.block_until_ready(out)

    ref = _ref_bart_attention(query, key_in, value, params, n_heads,
                              attn_mask=attn_mask,
                              key_padding_mask=key_padding_mask)

    assert out.shape == (L, B, d_model)
    assert out.dtype == jnp.float32
    assert bool(jnp.all(jnp.isfinite(out)))
    err = float(jnp.max(jnp.abs(out - ref)))
    assert jnp.allclose(out, ref, atol=2e-3, rtol=2e-3), f"max abs err {err}"
    print("KERNEL_OK")
</pallas_src>

<mosaic_0001>
module attributes {stable_mosaic.version = 11 : i64} {
  func.func @_linear_kernel(%arg0: i32, %arg1: i32, %arg2: i32, %arg3: memref<16x32xf32, #tpu.memory_space<vmem>>, %arg4: memref<32x32xf32, #tpu.memory_space<vmem>>, %arg5: memref<1x32xf32, #tpu.memory_space<vmem>>, %arg6: memref<16x32xf32, #tpu.memory_space<vmem>>, %arg7: memref<16x32xf32, #tpu.memory_space<vmem>>) attributes {dimension_semantics = [#tpu.dimension_semantics<parallel>, #tpu.dimension_semantics<parallel>, #tpu.dimension_semantics<arbitrary>], iteration_bounds = array<i64: 1, 1, 1>, scalar_prefetch = 0 : i64, scratch_operands = 1 : i64, tpu.core_type = #tpu.core_type<tc>, window_params = [{transform_indices = @transform_0, window_bounds = array<i64: 16, 32>}, {transform_indices = @transform_1, window_bounds = array<i64: 32, 32>}, {transform_indices = @transform_2, window_bounds = array<i64: 1, 32>}, {transform_indices = @transform_3, window_bounds = array<i64: 16, 32>}]} {
    %c0_i32 = arith.constant 0 : i32
    %0 = arith.cmpi eq, %arg2, %c0_i32 : i32
    %1 = arith.extui %0 : i1 to i32
    %c0_i32_0 = arith.constant 0 : i32
    %2 = arith.cmpi ne, %1, %c0_i32_0 : i32
    scf.if %2 {
      %cst_10 = arith.constant 0.000000e+00 : f32
      %12 = vector.broadcast %cst_10 : f32 to vector<16x32xf32>
      %c0_11 = arith.constant 0 : index
      %c0_12 = arith.constant 0 : index
      %13 = vector.load %arg7[%c0_11, %c0_12] : memref<16x32xf32, #tpu.memory_space<vmem>>, vector<16x32xf32>
      tpu.vector_store %arg7[%c0_11, %c0_12], %12 {strides = array<i32>} : memref<16x32xf32, #tpu.memory_space<vmem>>, vector<16x32xf32>,
    } else {
    }
    %c0 = arith.constant 0 : index
    %c0_1 = arith.constant 0 : index
    %3 = vector.load %arg7[%c0, %c0_1] : memref<16x32xf32, #tpu.memory_space<vmem>>, vector<16x32xf32>
    %c0_2 = arith.constant 0 : index
    %c0_3 = arith.constant 0 : index
    %4 = vector.load %arg3[%c0_2, %c0_3] : memref<16x32xf32, #tpu.memory_space<vmem>>, vector<16x32xf32>
    %c0_4 = arith.constant 0 : index
    %c0_5 = arith.constant 0 : index
    %5 = vector.load %arg4[%c0_4, %c0_5] : memref<32x32xf32, #tpu.memory_space<vmem>>, vector<32x32xf32>
    %cst = arith.constant dense<0.000000e+00> : vector<16x32xf32>
    %6 = tpu.matmul %4, %5, %cst {dimension_numbers = #tpu.dot_dimension_numbers<[1], [0], [0], [1], [0, 0, 1, 1], [], []>} : vector<16x32xf32>, vector<32x32xf32>, vector<16x32xf32> -> vector<16x32xf32>
    %7 = arith.addf %3, %6 : vector<16x32xf32>
    %c0_6 = arith.constant 0 : index
    %c0_7 = arith.constant 0 : index
    %8 = vector.load %arg7[%c0_6, %c0_7] : memref<16x32xf32, #tpu.memory_space<vmem>>, vector<16x32xf32>
    tpu.vector_store %arg7[%c0_6, %c0_7], %7 {strides = array<i32>} : memref<16x32xf32, #tpu.memory_space<vmem>>, vector<16x32xf32>,
    %c0_i32_8 = arith.constant 0 : i32
    %9 = arith.cmpi eq, %arg2, %c0_i32_8 : i32
    %10 = arith.extui %9 : i1 to i32
    %c0_i32_9 = arith.constant 0 : i32
    %11 = arith.cmpi ne, %10, %c0_i32_9 : i32
    scf.if %11 {
      %c0_10 = arith.constant 0 : index
      %c0_11 = arith.constant 0 : index
      %12 = vector.load %arg7[%c0_10, %c0_11] : memref<16x32xf32, #tpu.memory_space<vmem>>, vector<16x32xf32>
      %c0_12 = arith.constant 0 : index
      %c0_13 = arith.constant 0 : index
      %13 = vector.load %arg5[%c0_12, %c0_13] : memref<1x32xf32, #tpu.memory_space<vmem>>, vector<1x32xf32>
      %14 = vector.broadcast %13 : vector<1x32xf32> to vector<16x32xf32>
      %15 = arith.addf %12, %14 : vector<16x32xf32>
      %c0_14 = arith.constant 0 : index
      %c0_15 = arith.constant 0 : index
      %16 = vector.load %arg6[%c0_14, %c0_15] : memref<16x32xf32, #tpu.memory_space<vmem>>, vector<16x32xf32>
      tpu.vector_store %arg6[%c0_14, %c0_15], %15 {strides = array<i32>} : memref<16x32xf32, #tpu.memory_space<vmem>>, vector<16x32xf32>,
    } else {
    }
    return
  }
  func.func @transform_0(%arg0: i32, %arg1: i32, %arg2: i32) -> (i32, i32) {
    %c0_i32 = arith.constant 0 : i32
    return %arg0, %arg2 : i32, i32
  }
  func.func @transform_1(%arg0: i32, %arg1: i32, %arg2: i32) -> (i32, i32) {
    %c0_i32 = arith.constant 0 : i32
    return %arg2, %arg1 : i32, i32
  }
  func.func @transform_2(%arg0: i32, %arg1: i32, %arg2: i32) -> (i32, i32) {
    %c0_i32 = arith.constant 0 : i32
    %c0_i32_0 = arith.constant 0 : i32
    return %c0_i32, %arg1 : i32, i32
  }
  func.func @transform_3(%arg0: i32, %arg1: i32, %arg2: i32) -> (i32, i32) {
    %c0_i32 = arith.constant 0 : i32
    return %arg0, %arg1 : i32, i32
  }
}

module attributes {stable_mosaic.version = 11 : i64} {
  func.func @_linear_kernel(%arg0: i32, %arg1: i32, %arg2: i32, %arg3: memref<16x32xf32, #tpu.memory_space<vmem>>, %arg4: memref<32x32xf32, #tpu.memory_space<vmem>>, %arg5: memref<1x32xf32, #tpu.memory_space<vmem>>, %arg6: memref<16x32xf32, #tpu.memory_space<vmem>>, %arg7: memref<16x32xf32, #tpu.memory_space<vmem>>) attributes {dimension_semantics = [#tpu.dimension_semantics<parallel>, #tpu.dimension_semantics<parallel>, #tpu.dimension_semantics<arbitrary>], iteration_bounds = array<i64: 1, 1, 1>, scalar_prefetch = 0 : i64, scratch_operands = 1 : i64, tpu.core_type = #tpu.core_type<tc>, window_params = [{transform_indices = @transform_0, window_bounds = array<i64: 16, 32>}, {transform_indices = @transform_1, window_bounds = array<i64: 32, 32>}, {transform_indices = @transform_2, window_bounds = array<i64: 1, 32>}, {transform_indices = @transform_3, window_bounds = array<i64: 16, 32>}]} {
    %c0_i32 = arith.constant 0 : i32
    %0 = arith.cmpi eq, %arg2, %c0_i32 : i32
    %1 = arith.extui %0 : i1 to i32
    %c0_i32_0 = arith.constant 0 : i32
    %2 = arith.cmpi ne, %1, %c0_i32_0 : i32
    scf.if %2 {
      %cst_10 = arith.constant 0.000000e+00 : f32
      %12 = vector.broadcast %cst_10 : f32 to vector<16x32xf32>
      %c0_11 = arith.constant 0 : index
      %c0_12 = arith.constant 0 : index
      %13 = vector.load %arg7[%c0_11, %c0_12] : memref<16x32xf32, #tpu.memory_space<vmem>>, vector<16x32xf32>
      tpu.vector_store %arg7[%c0_11, %c0_12], %12 {strides = array<i32>} : memref<16x32xf32, #tpu.memory_space<vmem>>, vector<16x32xf32>,
    } else {
    }
    %c0 = arith.constant 0 : index
    %c0_1 = arith.constant 0 : index
    %3 = vector.load %arg7[%c0, %c0_1] : memref<16x32xf32, #tpu.memory_space<vmem>>, vector<16x32xf32>
    %c0_2 = arith.constant 0 : index
    %c0_3 = arith.constant 0 : index
    %4 = vector.load %arg3[%c0_2, %c0_3] : memref<16x32xf32, #tpu.memory_space<vmem>>, vector<16x32xf32>
    %c0_4 = arith.constant 0 : index
    %c0_5 = arith.constant 0 : index
    %5 = vector.load %arg4[%c0_4, %c0_5] : memref<32x32xf32, #tpu.memory_space<vmem>>, vector<32x32xf32>
    %cst = arith.constant dense<0.000000e+00> : vector<16x32xf32>
    %6 = tpu.matmul %4, %5, %cst {dimension_numbers = #tpu.dot_dimension_numbers<[1], [0], [0], [1], [0, 0, 1, 1], [], []>} : vector<16x32xf32>, vector<32x32xf32>, vector<16x32xf32> -> vector<16x32xf32>
    %7 = arith.addf %3, %6 : vector<16x32xf32>
    %c0_6 = arith.constant 0 : index
    %c0_7 = arith.constant 0 : index
    %8 = vector.load %arg7[%c0_6, %c0_7] : memref<16x32xf32, #tpu.memory_space<vmem>>, vector<16x32xf32>
    tpu.vector_store %arg7[%c0_6, %c0_7], %7 {strides = array<i32>} : memref<16x32xf32, #tpu.memory_space<vmem>>, vector<16x32xf32>,
    %c0_i32_8 = arith.constant 0 : i32
    %9 = arith.cmpi eq, %arg2, %c0_i32_8 : i32
    %10 = arith.extui %9 : i1 to i32
    %c0_i32_9 = arith.constant 0 : i32
    %11 = arith.cmpi ne, %10, %c0_i32_9 : i32
    scf.if %11 {
      %c0_10 = arith.constant 0 : index
      %c0_11 = arith.constant 0 : index
      %12 = vector.load %arg7[%c0_10, %c0_11] : memref<16x32xf32, #tpu.memory_space<vmem>>, vector<16x32xf32>
      %c0_12 = arith.constant 0 : index
      %c0_13 = arith.constant 0 : index
      %13 = vector.load %arg5[%c0_12, %c0_13] : memref<1x32xf32, #tpu.memory_space<vmem>>, vector<1x32xf32>
      %14 = vector.broadcast %13 : vector<1x32xf32> to vector<16x32xf32>
      %15 = arith.addf %12, %14 : vector<16x32xf32>
      %c0_14 = arith.constant 0 : index
      %c0_15 = arith.constant 0 : index
      %16 = vector.load %arg6[%c0_14, %c0_15] : memref<16x32xf32, #tpu.memory_space<vmem>>, vector<16x32xf32>
      tpu.vector_store %arg6[%c0_14, %c0_15], %15 {strides = array<i32>} : memref<16x32xf32, #tpu.memory_space<vmem>>, vector<16x32xf32>,
    } else {
    }
    return
  }
  func.func @transform_0(%arg0: i32, %arg1: i32, %arg2: i32) -> (i32, i32) {
    %c0_i32 = arith.constant 0 : i32
    return %arg0, %arg2 : i32, i32
  }
  func.func @transform_1(%arg0: i32, %arg1: i32, %arg2: i32) -> (i32, i32) {
    %c0_i32 = arith.constant 0 : i32
    return %arg2, %arg1 : i32, i32
  }
  func.func @transform_2(%arg0: i32, %arg1: i32, %arg2: i32) -> (i32, i32) {
    %c0_i32 = arith.constant 0 : i32
    %c0_i32_0 = arith.constant 0 : i32
    return %c0_i32, %arg1 : i32, i32
  }
  func.func @transform_3(%arg0: i32, %arg1: i32, %arg2: i32) -> (i32, i32) {
    %c0_i32 = arith.constant 0 : i32
    return %arg0, %arg1 : i32, i32
  }
}

module attributes {stable_mosaic.version = 11 : i64} {
  func.func @_attn_kernel(%arg0: i32, %arg1: i32, %arg2: i32, %arg3: memref<1x4x8x8xf32, #tpu.memory_space<vmem>>, %arg4: memref<1x4x8x8xf32, #tpu.memory_space<vmem>>, %arg5: memref<1x4x8x8xf32, #tpu.memory_space<vmem>>, %arg6: memref<1x8x8xf32, #tpu.memory_space<vmem>>, %arg7: memref<1x4x8x8xf32, #tpu.memory_space<vmem>>, %arg8: memref<4x8x1xf32, #tpu.memory_space<vmem>>, %arg9: memref<4x8x1xf32, #tpu.memory_space<vmem>>, %arg10: memref<4x8x8xf32, #tpu.memory_space<vmem>>) attributes {dimension_semantics = [#tpu.dimension_semantics<parallel>, #tpu.dimension_semantics<parallel>, #tpu.dimension_semantics<arbitrary>], iteration_bounds = array<i64: 2, 1, 1>, scalar_prefetch = 0 : i64, scratch_operands = 3 : i64, tpu.core_type = #tpu.core_type<tc>, window_params = [{transform_indices = @transform_0, window_bounds = array<i64: 1, 4, 8, 8>}, {transform_indices = @transform_1, window_bounds = array<i64: 1, 4, 8, 8>}, {transform_indices = @transform_2, window_bounds = array<i64: 1, 4, 8, 8>}, {transform_indices = @transform_3, window_bounds = array<i64: 1, 8, 8>}, {transform_indices = @transform_4, window_bounds = array<i64: 1, 4, 8, 8>}]} {
    %c0_i32 = arith.constant 0 : i32
    %0 = arith.cmpi eq, %arg2, %c0_i32 : i32
    %1 = arith.extui %0 : i1 to i32
    %c0_i32_0 = arith.constant 0 : i32
    %2 = arith.cmpi ne, %1, %c0_i32_0 : i32
    scf.if %2 {
      %cst_38 = arith.constant 0xFF800000 : f32
      %40 = vector.broadcast %cst_38 : f32 to vector<4x8x1xf32>
      %c0_39 = arith.constant 0 : index
      %c0_40 = arith.constant 0 : index
      %c0_41 = arith.constant 0 : index
      %41 = vector.load %arg8[%c0_39, %c0_40, %c0_41] : memref<4x8x1xf32, #tpu.memory_space<vmem>>, vector<4x8x1xf32>
      tpu.vector_store %arg8[%c0_39, %c0_40, %c0_41], %40 {strides = array<i32>} : memref<4x8x1xf32, #tpu.memory_space<vmem>>, vector<4x8x1xf32>,
      %cst_42 = arith.constant 0.000000e+00 : f32
      %42 = vector.broadcast %cst_42 : f32 to vector<4x8x1xf32>
      %c0_43 = arith.constant 0 : index
      %c0_44 = arith.constant 0 : index
      %c0_45 = arith.constant 0 : index
      %43 = vector.load %arg9[%c0_43, %c0_44, %c0_45] : memref<4x8x1xf32, #tpu.memory_space<vmem>>, vector<4x8x1xf32>
      tpu.vector_store %arg9[%c0_43, %c0_44, %c0_45], %42 {strides = array<i32>} : memref<4x8x1xf32, #tpu.memory_space<vmem>>, vector<4x8x1xf32>,
      %cst_46 = arith.constant 0.000000e+00 : f32
      %44 = vector.broadcast %cst_46 : f32 to vector<4x8x8xf32>
      %c0_47 = arith.constant 0 : index
      %c0_48 = arith.constant 0 : index
      %c0_49 = arith.constant 0 : index
      %45 = vector.load %arg10[%c0_47, %c0_48, %c0_49] : memref<4x8x8xf32, #tpu.memory_space<vmem>>, vector<4x8x8xf32>
      tpu.vector_store %arg10[%c0_47, %c0_48, %c0_49], %44 {strides = array<i32>} : memref<4x8x8xf32, #tpu.memory_space<vmem>>, vector<4x8x8xf32>,
    } else {
    }
    %c0 = arith.constant 0 : index
    %c0_1 = arith.constant 0 : index
    %c0_2 = arith.constant 0 : index
    %c0_3 = arith.constant 0 : index
    %3 = vector.load %arg3[%c0, %c0_1, %c0_2, %c0_3] : memref<1x4x8x8xf32, #tpu.memory_space<vmem>>, vector<1x4x8x8xf32>
    %4 = vector.shape_cast %3 : vector<1x4x8x8xf32> to vector<4x8x8xf32>
    %c0_4 = arith.constant 0 : index
    %c0_5 = arith.constant 0 : index
    %c0_6 = arith.constant 0 : index
    %c0_7 = arith.constant 0 : index
    %5 = vector.load %arg4[%c0_4, %c0_5, %c0_6, %c0_7] : memref<1x4x8x8xf32, #tpu.memory_space<vmem>>, vector<1x4x8x8xf32>
    %6 = vector.shape_cast %5 : vector<1x4x8x8xf32> to vector<4x8x8xf32>
    "tpu.trace_start"() <{level = 10 : i32, message = "hqd,hkd->hqk"}> : () -> ()
    %cst = arith.constant dense<0.000000e+00> : vector<4x8x8xf32>
    %7 = tpu.matmul %4, %6, %cst {dimension_numbers = #tpu.dot_dimension_numbers<[2], [2], [1], [1], [0, 0, 0, 1, 1, 1], [0], [0]>} : vector<4x8x8xf32>, vector<4x8x8xf32>, vector<4x8x8xf32> -> vector<4x8x8xf32>
    "tpu.trace_stop"() : () -> ()
    %c0_8 = arith.constant 0 : index
    %c0_9 = arith.constant 0 : index
    %c0_10 = arith.constant 0 : index
    %8 = vector.load %arg6[%c0_8, %c0_9, %c0_10] : memref<1x8x8xf32, #tpu.memory_space<vmem>>, vector<1x8x8xf32>
    %9 = vector.shape_cast %8 : vector<1x8x8xf32> to vector<8x8xf32>
    %10 = vector.shape_cast %9 : vector<8x8xf32> to vector<1x8x8xf32>
    %11 = vector.broadcast %10 : vector<1x8x8xf32> to vector<4x8x8xf32>
    %12 = arith.addf %7, %11 : vector<4x8x8xf32>
    %c0_11 = arith.constant 0 : index
    %c0_12 = arith.constant 0 : index
    %c0_13 = arith.constant 0 : index
    %13 = vector.load %arg8[%c0_11, %c0_12, %c0_13] : memref<4x8x1xf32, #tpu.memory_space<vmem>>, vector<4x8x1xf32>
    %cst_14 = arith.constant dense<0xFF800000> : vector<4x8xf32>
    %14 = vector.multi_reduction <maximumf>, %12, %cst_14 [2] : vector<4x8x8xf32> to vector<4x8xf32>
    %15 = vector.shape_cast %14 : vector<4x8xf32> to vector<4x8x1xf32>
    %16 = arith.maximumf %13, %15 : vector<4x8x1xf32>
    %17 = arith.subf %13, %16 : vector<4x8x1xf32>
    %18 = math.exp %17 : vector<4x8x1xf32>
    %19 = vector.broadcast %16 : vector<4x8x1xf32> to vector<4x8x8xf32>
    %20 = arith.subf %12, %19 : vector<4x8x8xf32>
    %21 = math.exp %20 : vector<4x8x8xf32>
    %c0_15 = arith.constant 0 : index
    %c0_16 = arith.constant 0 : index
    %c0_17 = arith.constant 0 : index
    %22 = vector.load %arg9[%c0_15, %c0_16, %c0_17] : memref<4x8x1xf32, #tpu.memory_space<vmem>>, vector<4x8x1xf32>
    %23 = arith.mulf %18, %22 : vector<4x8x1xf32>
    %cst_18 = arith.constant dense<0.000000e+00> : vector<4x8xf32>
    %24 = vector.multi_reduction <add>, %21, %cst_18 [2] : vector<4x8x8xf32> to vector<4x8xf32>
    %25 = vector.shape_cast %24 : vector<4x8xf32> to vector<4x8x1xf32>
    %26 = arith.addf %23, %25 : vector<4x8x1xf32>
    %c0_19 = arith.constant 0 : index
    %c0_20 = arith.constant 0 : index
    %c0_21 = arith.constant 0 : index
    %27 = vector.load %arg9[%c0_19, %c0_20, %c0_21] : memref<4x8x1xf32, #tpu.memory_space<vmem>>, vector<4x8x1xf32>
    tpu.vector_store %arg9[%c0_19, %c0_20, %c0_21], %26 {strides = array<i32>} : memref<4x8x1xf32, #tpu.memory_space<vmem>>, vector<4x8x1xf32>,
    %c0_22 = arith.constant 0 : index
    %c0_23 = arith.constant 0 : index
    %c0_24 = arith.constant 0 : index
    %28 = vector.load %arg10[%c0_22, %c0_23, %c0_24] : memref<4x8x8xf32, #tpu.memory_space<vmem>>, vector<4x8x8xf32>
    %29 = vector.broadcast %18 : vector<4x8x1xf32> to vector<4x8x8xf32>
    %30 = arith.mulf %29, %28 : vector<4x8x8xf32>
    %c0_25 = arith.constant 0 : index
    %c0_26 = arith.constant 0 : index
    %c0_27 = arith.constant 0 : index
    %c0_28 = arith.constant 0 : index
    %31 = vector.load %arg5[%c0_25, %c0_26, %c0_27, %c0_28] : memref<1x4x8x8xf32, #tpu.memory_space<vmem>>, vector<1x4x8x8xf32>
    %32 = vector.shape_cast %31 : vector<1x4x8x8xf32> to vector<4x8x8xf32>
    "tpu.trace_start"() <{level = 10 : i32, message = "hqk,hkd->hqd"}> : () -> ()
    %cst_29 = arith.constant dense<0.000000e+00> : vector<4x8x8xf32>
    %33 = tpu.matmul %21, %32, %cst_29 {dimension_numbers = #tpu.dot_dimension_numbers<[2], [1], [1], [2], [0, 0, 0, 1, 1, 2], [0], [0]>} : vector<4x8x8xf32>, vector<4x8x8xf32>, vector<4x8x8xf32> -> vector<4x8x8xf32>
    "tpu.trace_stop"() : () -> ()
    %34 = arith.addf %30, %33 : vector<4x8x8xf32>
    %c0_30 = arith.constant 0 : index
    %c0_31 = arith.constant 0 : index
    %c0_32 = arith.constant 0 : index
    %35 = vector.load %arg10[%c0_30, %c0_31, %c0_32] : memref<4x8x8xf32, #tpu.memory_space<vmem>>, vector<4x8x8xf32>
    tpu.vector_store %arg10[%c0_30, %c0_31, %c0_32], %34 {strides = array<i32>} : memref<4x8x8xf32, #tpu.memory_space<vmem>>, vector<4x8x8xf32>,
    %c0_33 = arith.constant 0 : index
    %c0_34 = arith.constant 0 : index
    %c0_35 = arith.constant 0 : index
    %36 = vector.load %arg8[%c0_33, %c0_34, %c0_35] : memref<4x8x1xf32, #tpu.memory_space<vmem>>, vector<4x8x1xf32>
    tpu.vector_store %arg8[%c0_33, %c0_34, %c0_35], %16 {strides = array<i32>} : memref<4x8x1xf32, #tpu.memory_space<vmem>>, vector<4x8x1xf32>,
    %c0_i32_36 = arith.constant 0 : i32
    %37 = arith.cmpi eq, %arg2, %c0_i32_36 : i32
    %38 = arith.extui %37 : i1 to i32
    %c0_i32_37 = arith.constant 0 : i32
    %39 = arith.cmpi ne, %38, %c0_i32_37 : i32
    scf.if %39 {
      %c0_38 = arith.constant 0 : index
      %c0_39 = arith.constant 0 : index
      %c0_40 = arith.constant 0 : index
      %40 = vector.load %arg10[%c0_38, %c0_39, %c0_40] : memref<4x8x8xf32, #tpu.memory_space<vmem>>, vector<4x8x8xf32>
      %c0_41 = arith.constant 0 : index
      %c0_42 = arith.constant 0 : index
      %c0_43 = arith.constant 0 : index
      %41 = vector.load %arg9[%c0_41, %c0_42, %c0_43] : memref<4x8x1xf32, #tpu.memory_space<vmem>>, vector<4x8x1xf32>
      %42 = vector.broadcast %41 : vector<4x8x1xf32> to vector<4x8x8xf32>
      %43 = arith.divf %40, %42 : vector<4x8x8xf32>
      %c0_44 = arith.constant 0 : index
      %c0_45 = arith.constant 0 : index
      %c0_46 = arith.constant 0 : index
      %c0_47 = arith.constant 0 : index
      %44 = vector.load %arg7[%c0_44, %c0_45, %c0_46, %c0_47] : memref<1x4x8x8xf32, #tpu.memory_space<vmem>>, vector<1x4x8x8xf32>
      %45 = vector.shape_cast %44 : vector<1x4x8x8xf32> to vector<4x8x8xf32>
      %46 = vector.shape_cast %43 : vector<4x8x8xf32> to vector<1x4x8x8xf32>
      tpu.vector_store %arg7[%c0_44, %c0_45, %c0_46, %c0_47], %46 {strides = array<i32>} : memref<1x4x8x8xf32, #tpu.memory_space<vmem>>, vector<1x4x8x8xf32>,
    } else {
    }
    return
  }
  func.func @transform_0(%arg0: i32, %arg1: i32, %arg2: i32) -> (i32, i32, i32, i32) {
    %c0_i32 = arith.constant 0 : i32
    %c0_i32_0 = arith.constant 0 : i32
    %c0_i32_1 = arith.constant 0 : i32
    return %arg0, %c0_i32, %arg1, %c0_i32_0 : i32, i32, i32, i32
  }
  func.func @transform_1(%arg0: i32, %arg1: i32, %arg2: i32) -> (i32, i32, i32, i32) {
    %c0_i32 = arith.constant 0 : i32
    %c0_i32_0 = arith.constant 0 : i32
    %c0_i32_1 = arith.constant 0 : i32
    return %arg0, %c0_i32, %arg2, %c0_i32_0 : i32, i32, i32, i32
  }
  func.func @transform_2(%arg0: i32, %arg1: i32, %arg2: i32) -> (i32, i32, i32, i32) {
    %c0_i32 = arith.constant 0 : i32
    %c0_i32_0 = arith.constant 0 : i32
    %c0_i32_1 = arith.constant 0 : i32
    return %arg0, %c0_i32, %arg2, %c0_i32_0 : i32, i32, i32, i32
  }
  func.func @transform_3(%arg0: i32, %arg1: i32, %arg2: i32) -> (i32, i32, i32) {
    %c0_i32 = arith.constant 0 : i32
    return %arg0, %arg1, %arg2 : i32, i32, i32
  }
  func.func @transform_4(%arg0: i32, %arg1: i32, %arg2: i32) -> (i32, i32, i32, i32) {
    %c0_i32 = arith.constant 0 : i32
    %c0_i32_0 = arith.constant 0 : i32
    %c0_i32_1 = arith.constant 0 : i32
    return %arg0, %c0_i32, %arg1, %c0_i32_0 : i32, i32, i32, i32
  }
}

</mosaic_0001>

<bundles_post_ra>
// kernel: bart_attention.6
= control target key start
LH: loop header
LB: loop body
LE: loop exit
PB: predicated region body
PF: predicated region fallthrough
CT: control target
= control target key end

     0   :  { %vm18_vm0 = vcmask 261120   ;;  %v156_v2 = vmov 0.0   ;;  %s212_s1 = inlined_call_operand.vmem [shape: f32[32,32], index: 1, kind: input, shape index: {}]   ;;  %s213_s0 = inlined_call_operand.vmem [shape: f32[16,32], index: 0, kind: input, shape index: {}]   ;;  %s214_s2 = inlined_call_operand.vmem [shape: f32[1,32], index: 2, kind: input, shape index: {}]   ;;  %s215_s3 = inlined_call_operand.vmem [shape: f32[16,32], index: 3, kind: output, shape index: {}]  }
   0x1   :  { %v28_v0 = vld [vmem:[%s212_s1 + $0x18] sm:$0xff]  ;;  %v27_v1 = vld [vmem:[%s212_s1 + $0x10] sm:$0xff]  ;;  %20 = vst.msk [vmem:[#allocation2 + $0x8] sm:$0xff] %vm18_vm0, %v156_v2  ;;  %19 = vst.msk [vmem:[#allocation2] sm:$0xff] %vm18_vm0, %v156_v2 }
   0x2   :  { %144 = vmatprep.subr.mxu0 %v28_v0  ;;  %v23_v3 = vld [vmem:[%s213_s0] sm:$0xff]  ;;  %v26_v4 = vld [vmem:[%s212_s1 + $0x8] sm:$0xff] }
   0x3   :  { %145 = vmatpush3.msra.mxu0 %v28_v0  ;;  %152 = vmatprep.mubr.msk.f32.mxu0 %vm18_vm0, %v23_v3  ;;  %v25_v5 = vld [vmem:[%s212_s1] sm:$0xff]  ;;  %v24_v6 = vld [vmem:[%s213_s0 + $0x8] sm:$0xff] }
   0x4   :  { %146 = vmatprep.subr.mxu0 %v27_v1  ;;  %v137_v13 = vld [vmem:[%s214_s2] ss:$0 sm:$0xff] }
   0x5   :  { %147 = vmatpush3.msra.mxu0 %v27_v1 }
   0x6   :  { %148 = vmatprep.subr.mxu0 %v26_v4 }
   0x7   :  { %149 = vmatpush3.msra.mxu0 %v26_v4 }
   0x8   :  { %150 = vmatprep.subr.mxu0 %v25_v5  ;;  %v22_v7 = vld [vmem:[#allocation2 + $0x8] sm:$0xff]  ;;  %v21_v9 = vld [vmem:[#allocation2] sm:$0xff] }
   0x9   :  { %151 = vmatpush3.msra.mxu0 %v25_v5 }
   0xa   :  { %153 = vmatmul.mubr.msk.f32.vlgmr.msra.gmra.mxu0 %vm18_vm0, %v24_v6 }
  0xca   :  { %v154_v8 = vpop.f32.mrf.mxu0 }
  0xcb   :  { %v112_v10 = vadd.f32 %v154_v8, %v22_v7 }
  0xcc   :  { %v102_v11 = vpop.f32.mrf.mxu0 }
  0xcd   :  { %114 = vst.msk [vmem:[#allocation2 + $0x8] sm:$0xff] %vm18_vm0, %v112_v10  ;;  %v111_v12 = vadd.f32 %v102_v11, %v21_v9 }
  0xcf   :  { %113 = vst.msk [vmem:[#allocation2] sm:$0xff] %vm18_vm0, %v111_v12 }
  0xd4   :  { %v119_v14 = vld [vmem:[#allocation2 + $0x8] sm:$0xff] }
  0xd5   :  { %v128_v15 = vadd.f32 %v137_v13, %v119_v14 }
  0xd6   :  { %v118_v16 = vld [vmem:[#allocation2] sm:$0xff] }
  0xd7   :  { %130 = vst.msk [vmem:[%s215_s3 + $0x8] sm:$0xff] %vm18_vm0, %v128_v15  ;;  %v127_v17 = vadd.f32 %v137_v13, %v118_v16 }
  0xd9   :  { %129 = vst.msk [vmem:[%s215_s3] sm:$0xff] %vm18_vm0, %v127_v17 }

// kernel: bart_attention.9
= control target key start
LH: loop header
LB: loop body
LE: loop exit
PB: predicated region body
PF: predicated region fallthrough
CT: control target
= control target key end

     0   :  { %vm19_vm0 = vcmask 261120   ;;  %v194_v3 = vmov 0.0   ;;  %s250_s0 = inlined_call_operand.vmem [shape: f32[16,32], index: 0, kind: input, shape index: {}]   ;;  %s251_s1 = inlined_call_operand.vmem [shape: f32[32,32], index: 1, kind: input, shape index: {}]   ;;  %s252_s2 = inlined_call_operand.vmem [shape: f32[1,32], index: 2, kind: input, shape index: {}]   ;;  %s253_s3 = inlined_call_operand.hbm [shape: f32[16,32], index: 3, kind: output, shape index: {}]  }
   0x1   :  { %v29_v0 = vld [vmem:[%s251_s1 + $0x18] sm:$0xff]  ;;  %v28_v1 = vld [vmem:[%s251_s1 + $0x10] sm:$0xff]  ;;  %v24_v2 = vld [vmem:[%s250_s0] sm:$0xff]  ;;  %21 = vst.msk [vmem:[#allocation2 + $0x8] sm:$0xff] %vm19_vm0, %v194_v3 }
   0x2   :  { %157 = vmatprep.subr.mxu0 %v29_v0  ;;  %20 = vst.msk [vmem:[#allocation2] sm:$0xff] %vm19_vm0, %v194_v3  ;;  %v27_v4 = vld [vmem:[%s251_s1 + $0x8] sm:$0xff]  ;;  %165 = vmatprep.mubr.msk.f32.mxu0 %vm19_vm0, %v24_v2 }
   0x3   :  { %158 = vmatpush3.msra.mxu0 %v29_v0 }
   0x4   :  { %8 = vsyncpa [#allocation4], 0  ;;  %159 = vmatprep.subr.mxu0 %v28_v1  ;;  %v26_v5 = vld [vmem:[%s251_s1] sm:$0xff]  ;;  %v25_v6 = vld [vmem:[%s250_s0 + $0x8] sm:$0xff]  ;;  %s195_s25 = smov [#allocation3]  }
   0x5   :  { %160 = vmatpush3.msra.mxu0 %v28_v1  ;;  %v150_v13 = vld [vmem:[%s252_s2] ss:$0 sm:$0xff]  ;;  %s137_s0 = sshll.u32 %s195_s25, 4  ;;  %s138_s0 = int_to_ptr.vmem [resolvable:$true] %s137_s0 }
   0x6   :  { %161 = vmatprep.subr.mxu0 %v27_v4  ;;  %s172_s26 = scalar_lea.vmem %s138_s0, 256  ;;  %p177_p1 = scmp.lt.s32.totalorder %s138_s0, %s138_s0 }
   0x7   :  { %162 = vmatpush3.msra.mxu0 %v27_v4  ;;  %p173_p0 = scmp.ne.s32.totalorder %s138_s0, %s172_s26  ;;  %p178_p2 = scmp.lt.s32.totalorder %s172_s26, %s172_s26 }
   0x8   :  { %163 = vmatprep.subr.mxu0 %v26_v5  ;;  %v23_v7 = vld [vmem:[#allocation2 + $0x8] sm:$0xff] }
   0x9   :  { %164 = vmatpush3.msra.mxu0 %v26_v5  ;;  %v22_v9 = vld [vmem:[#allocation2] sm:$0xff]  ;;  %p179_p3 = por %p178_p2, %p177_p1 }
   0xa   :  { %166 = vmatmul.mubr.msk.f32.vlgmr.msra.gmra.mxu0 %vm19_vm0, %v25_v6 }
   0xb   :  { %p180_p4 = pnand %p179_p3, %p173_p0 }
  0xca   :  { %v167_v8 = vpop.f32.mrf.mxu0 }
  0xcb   :  { %v113_v10 = vadd.f32 %v167_v8, %v23_v7 }
  0xcc   :  { %v103_v11 = vpop.f32.mrf.mxu0 }
  0xcd   :  { %115 = vst.msk [vmem:[#allocation2 + $0x8] sm:$0xff] %vm19_vm0, %v113_v10  ;;  %v112_v12 = vadd.f32 %v103_v11, %v22_v9 }
  0xcf   :  { %114 = vst.msk [vmem:[#allocation2] sm:$0xff] %vm19_vm0, %v112_v12 }
  0xd4   :  { %v120_v14 = vld [vmem:[#allocation2 + $0x8] sm:$0xff] }
  0xd5   :  { %v129_v15 = vadd.f32 %v150_v13, %v120_v14 }
  0xd6   :  { %v119_v16 = vld [vmem:[#allocation2] sm:$0xff] }
  0xd7   :  { %v128_v17 = vadd.f32 %v150_v13, %v119_v16  ;;  %131 = vst.msk [vmem:[#allocation3 + $0x8] sm:$0xff] %vm19_vm0, %v129_v15 }
  0xd9   :  { %130 = vst.msk [vmem:[#allocation3] sm:$0xff] %vm19_vm0, %v128_v17 }
  0xda   :  { %183 = shalt.err (!%p180_p4)
}
  0xdb   :  { %s196_s27 = smov 128   ;;  %s197_s2 = smov 8  }
  0xdc   :  { %143 = dma.vmem_to_hbm [thread:$0]  %s138_s0, 256, %s253_s3, [#allocation4], %s196_s27, %s196_s27, %s197_s2  }
  0xdd   :  { %192 = dma.done.wait [#allocation4], 256  }
  0xde   :  { %193 = vsyncadd [#allocation4], 4294967040 }
  0xdf   :  { %147 = vsyncpa [#allocation4], 1 }

// kernel: bart_attention.8
= control target key start
LH: loop header
LB: loop body
LE: loop exit
PB: predicated region body
PF: predicated region fallthrough
CT: control target
= control target key end

     0   :  { %s1476_s15 = smov 0   ;;  %s1478_s16 = smov 0   ;;  %s1636_s0 = inlined_call_operand.vmem [shape: f32[2,4,8,8], index: 0, kind: input, shape index: {}]   ;;  %s1637_s1 = inlined_call_operand.vmem [shape: f32[2,4,8,8], index: 1, kind: input, shape index: {}]   ;;  %s1638_s2 = inlined_call_operand.vmem [shape: f32[2,4,8,8], index: 2, kind: input, shape index: {}]   ;;  %s1639_s3 = inlined_call_operand.vmem [shape: f32[2,8,8], index: 3, kind: input, shape index: {}]   ;;  %s1640_s4 = inlined_call_operand.vmem [shape: f32[2,4,8,8], index: 4, kind: output, shape index: {}]  }
   0x1   :  { %s1480_s17 = smov 0  }
   0x2 LB: > { %s33_s18 = sadd.s32 1, %s1441_s16  ;;  %p1285_p0 = scmp.ge.s32.totalorder %s1445_s17, 1  ;;  %s1445_s17 = sphi %s1480_s17, %s14_s17   ;;  %s1441_s16 = sphi %s1478_s16, %s1642_s16   ;;  %s1437_s15 = sphi %s1476_s15, %s1641_s15  }
   0x3   : > { %p35_p1 = scmp.ge.s32.totalorder %s33_s18, 2  ;;  %p237_p2 = scmp.lt.s32.totalorder %s1445_s17, 3 }
   0x5   : > { %s1644_s18 = smov (%p35_p1, %s33_s18), 0  ;;  %p238_p3 = pnand %p1285_p0, %p237_p2 }
   0x6   : > { %p295_p4 = scmp.lt.s32.totalorder (!%p238_p3), %s1437_s15, 1 }
   0x7   : > { %241 = sbr.rel (%p238_p3) target bundleno = 801 (0x321), region = 36 }
   0xc   : > { %vm350_vm0 = vcmask 64512   ;;  %v1447_v0 = vmov 0.0   ;;  %s1646_s15 = smov (!%p295_p4, %s1437_s15), 1  ;;  %vm1448_vm1 = vmmov 0   ;;  %vm341_vm2 = vcmask 7168  }
   0xd   : > { %1329 = vmatprep.subr.mxu0 %v1447_v0  ;;  %351 = vst.msk [vmem:[#allocation4] sm:$0xff] %vm350_vm0, %v1447_v0  ;;  %352 = vst.msk [vmem:[#allocation4 + $0x8] sm:$0xff] %vm350_vm0, %v1447_v0  ;;  %1334 = vmatprep.subr.mxu1 %v1447_v0  ;;  %s1511_s19 = sshll.u32 %s1646_s15, 5  ;;  %v1449_v9 = vmov -inf   ;;  %s1292_s26 = sshll.u32 %s1646_s15, 3  ;;  %v1450_v27 = vmov 0  }
   0xe   : > { %353 = vst.msk [vmem:[#allocation4 + $0x10] sm:$0xff] %vm350_vm0, %v1447_v0  ;;  %354 = vst.msk [vmem:[#allocation4 + $0x18] sm:$0xff] %vm350_vm0, %v1447_v0  ;;  %1331 = vmatprep.mubr.msk.f32.mxu0 %vm1448_vm1, %v1447_v0  ;;  %1336 = vmatprep.mubr.msk.f32.mxu1 %vm1448_vm1, %v1447_v0  ;;  %s310_s22 = scalar_lea.vmem %s1637_s1, %s1511_s19  ;;  %s302_s25 = scalar_lea.vmem %s1636_s0, %s1511_s19 }
   0xf   : > { %v359_v1 = vld [vmem:[%s310_s22] sm:$0xff]  ;;  %v360_v2 = vld [vmem:[%s310_s22 + $0x8] sm:$0xff]  ;;  %v361_v5 = vld [vmem:[%s310_s22 + $0x10] sm:$0xff]  ;;  %342 = vst.msk [vmem:[#allocation2] sm:$0xff] %vm341_vm2, %v1449_v9  ;;  %s328_s29 = scalar_lea.vmem %s1639_s3, %s1292_s26  ;;  %1397 = vset.pattern.permute.xlu0 %v1450_v27  ;;  %1398 = vset.pattern.permute.xlu1 %v1450_v27  ;;  %s1591_s6 = scalar_lea.vmem %s1638_s2, %s1511_s19 }
  0x10   : > { %1330 = vmatpush3.xpose.msk.msra.mxu0 %vm350_vm0, %v359_v1  ;;  %1335 = vmatpush3.xpose.msk.msra.mxu1 %vm350_vm0, %v360_v2  ;;  %v355_v3 = vld [vmem:[%s302_s25] sm:$0xff]  ;;  %v356_v4 = vld [vmem:[%s302_s25 + $0x8] sm:$0xff]  ;;  %v362_v6 = vld [vmem:[%s310_s22 + $0x18] sm:$0xff]  ;;  %343 = vst.msk [vmem:[#allocation2 + $0x8] sm:$0xff] %vm341_vm2, %v1449_v9  ;;  %s336_s9 = scalar_lea.vmem %s1640_s4, %s1511_s19 }
  0x11   : > { %1339 = vmatprep.subr.mxu0 %v1447_v0  ;;  %1344 = vmatprep.subr.mxu1 %v1447_v0  ;;  %v357_v7 = vld [vmem:[%s302_s25 + $0x10] sm:$0xff]  ;;  %v358_v8 = vld [vmem:[%s302_s25 + $0x18] sm:$0xff]  ;;  %344 = vst.msk [vmem:[#allocation2 + $0x10] sm:$0xff] %vm341_vm2, %v1449_v9  ;;  %345 = vst.msk [vmem:[#allocation2 + $0x18] sm:$0xff] %vm341_vm2, %v1449_v9 }
  0x12   : > { %346 = vst.msk [vmem:[#allocation3] sm:$0xff] %vm341_vm2, %v1447_v0  ;;  %347 = vst.msk [vmem:[#allocation3 + $0x8] sm:$0xff] %vm341_vm2, %v1447_v0  ;;  %v363_v10 = vld [vmem:[%s328_s29] sm:$0xff]  ;;  %v791_v45 = vld [vmem:[%s1591_s6 + $0x8] sm:$0xff] }
  0x13   : > { %1332 = vmatmul.mubr.msk.f32.vlgmr.msra.gmra.mxu0 %vm350_vm0, %v355_v3  ;;  %1337 = vmatmul.mubr.msk.f32.vlgmr.msra.gmra.mxu1 %vm350_vm0, %v356_v4  ;;  %348 = vst.msk [vmem:[#allocation3 + $0x10] sm:$0xff] %vm341_vm2, %v1447_v0  ;;  %349 = vst.msk [vmem:[#allocation3 + $0x18] sm:$0xff] %vm341_vm2, %v1447_v0  ;;  %v790_v44 = vld [vmem:[%s1591_s6] sm:$0xff]  ;;  %v792_v58 = vld [vmem:[%s1591_s6 + $0x10] sm:$0xff] }
  0x14   : > { %1340 = vmatpush3.xpose.msk.msra.mxu0 %vm350_vm0, %v361_v5  ;;  %1341 = vmatprep.mubr.msk.f32.mxu0 %vm1448_vm1, %v1447_v0  ;;  %v793_v61 = vld [vmem:[%s1591_s6 + $0x18] sm:$0xff] }
  0x15   : > { %1345 = vmatpush3.xpose.msk.msra.mxu1 %vm350_vm0, %v362_v6  ;;  %1346 = vmatprep.mubr.msk.f32.mxu1 %vm1448_vm1, %v1447_v0 }
  0x16   : > { %1349 = vmatprep.subr.mxu0 %v1447_v0  ;;  %1354 = vmatprep.subr.mxu1 %v1447_v0  ;;  %v1561_v28 = vld [vmem:[#allocation2] sm:$0xff] }
  0x17   : > { %1342 = vmatmul.mubr.msk.f32.vlgmr.msra.gmra.mxu0 %vm350_vm0, %v357_v7  ;;  %v670_v31 = vld [vmem:[#allocation2 + $0x8] sm:$0xff] }
  0x18   : > { %1347 = vmatmul.mubr.msk.f32.vlgmr.msra.gmra.mxu1 %vm350_vm0, %v358_v8  ;;  %1351 = vmatprep.mubr.msk.f32.mxu0 %vm1448_vm1, %v1447_v0  ;;  %v1566_v32 = vld [vmem:[#allocation2 + $0x10] sm:$0xff]  ;;  %v1576_v38 = vld [vmem:[#allocation2 + $0x18] sm:$0xff] }
  0x19   : > { %1356 = vmatprep.mubr.msk.f32.mxu1 %vm1448_vm1, %v1447_v0  ;;  %1350 = vmatpush3.msra.mxu0 %v790_v44 }
  0x1a   : > { %1359 = vmatprep.subr.mxu0 %v1447_v0  ;;  %1355 = vmatpush3.msra.mxu1 %v791_v45 }
  0x1b   : > { %1364 = vmatprep.subr.mxu1 %v1447_v0 }
  0xd3   : > { %v437_v11 = vpop.f32.mrf.mxu0  ;;  %v513_v12 = vpop.f32.mrf.mxu1 }
  0xd4   : > { %v438_v13 = vadd.f32 %v437_v11, %v363_v10  ;;  %v514_v14 = vadd.f32 %v513_v12, %v363_v10 }
  0xd5   : > { %v1333_v15 = vpop.f32.mrf.mxu0  ;;  %v1338_v16 = vpop.f32.mrf.mxu1 }
  0xd6   : > { %v673_v17 = vsel %vm350_vm0, %v438_v13, -inf  ;;  %v676_v20 = vsel %vm350_vm0, %v514_v14, -inf }
  0xd7   : > { %674 = vmax.xlane.f32.xlu0 %v673_v17  ;;  %v589_v18 = vpop.f32.mrf.mxu0 }
  0xd8   : > { %v590_v19 = vadd.f32 %v589_v18, %v363_v10  ;;  %v665_v21 = vpop.f32.mrf.mxu1  ;;  %v735_v18 = vld [vmem:[#allocation3 + $0x10] sm:$0xff] }
  0xd9   : > { %v1343_v22 = vpop.f32.mrf.mxu0  ;;  %v666_v23 = vadd.f32 %v665_v21, %v363_v10  ;;  %v733_v10 = vld [vmem:[#allocation3] sm:$0xff] }
  0xda   : > { %v1348_v24 = vpop.f32.mrf.mxu1  ;;  %v679_v25 = vsel %vm350_vm0, %v590_v19, -inf }
  0xdb   : > { %677 = vmax.xlane.f32.xlu0 %v676_v20  ;;  %680 = vmax.xlane.f32.xlu1 %v679_v25  ;;  %v682_v26 = vsel %vm350_vm0, %v666_v23, -inf }
  0xdf   : > { %683 = vmax.xlane.f32.xlu1 %v682_v26 }
 0x160   : > { %v675_v29 = vpop.xlane.xlu0 %674 }
 0x161   : > { %v1564_v30 = vmax.f32 %v1561_v28, %v675_v29 }
 0x163   : > { %v689_v33 = vsub.f32 %v1561_v28, %v1564_v30  ;;  %1094 = vst.msk [vmem:[#allocation2] sm:$0xff] %vm341_vm2, %v1564_v30  ;;  %703 = vperm.xlu0 %1397, %v1564_v30  }
 0x164   : > { %v678_v34 = vpop.xlane.xlu0 %677  ;;  %v681_v35 = vpop.xlane.xlu1 %680 }
 0x165   : > { %v686_v36 = vmax.f32 %v670_v31, %v678_v34  ;;  %v1574_v37 = vmax.f32 %v1566_v32, %v681_v35  ;;  %v693_v5 = vmul.f32 1.442695, %v689_v33  ;;  %v763_v35 = vld [vmem:[#allocation4 + $0x8] sm:$0xff] }
 0x167   : > { %v690_v39 = vsub.f32 %v670_v31, %v686_v36  ;;  %1095 = vst.msk [vmem:[#allocation2 + $0x8] sm:$0xff] %vm341_vm2, %v686_v36  ;;  %708 = vperm.xlu1 %1398, %v686_v36   ;;  %v691_v40 = vsub.f32 %v1566_v32, %v1574_v37  ;;  %1096 = vst.msk [vmem:[#allocation2 + $0x10] sm:$0xff] %vm341_vm2, %v1574_v37  ;;  %v762_v32 = vld [vmem:[#allocation4] sm:$0xff] }
 0x168   : > { %v684_v41 = vpop.xlane.xlu1 %683 }
 0x169   : > { %v688_v42 = vmax.f32 %v1576_v38, %v684_v41  ;;  %v695_v3 = vmul.f32 1.442695, %v690_v39 }
 0x16b   : > { %713 = vperm.xlu1 %1398, %v1574_v37   ;;  %v692_v43 = vsub.f32 %v1576_v38, %v688_v42  ;;  %1097 = vst.msk [vmem:[#allocation2 + $0x18] sm:$0xff] %vm341_vm2, %v688_v42 }
 0x16d   : > { %v699_v9 = vmul.f32 1.442695, %v692_v43 }
 0x16f   : > { %718 = vperm.xlu1 %1398, %v688_v42  }
 0x1de   : > { %v704_v46 = vpop.permute.xlu0 %703 }
 0x1df   : > { %v721_v47 = vsub.f32 %v438_v13, %v704_v46  ;;  %v734_v13 = vld [vmem:[#allocation3 + $0x8] sm:$0xff] }
 0x1e1   : > { %v725_v48 = vmul.f32 1.442695, %v721_v47 }
 0x1e2   : > { %v709_v49 = vpop.permute.xlu1 %708 }
 0x1e3   : > { %1399 = vpow2.f32 %v725_v48  ;;  %v722_v50 = vsub.f32 %v514_v14, %v709_v49 }
 0x1e5   : > { %v727_v51 = vmul.f32 1.442695, %v722_v50  ;;  %v765_v50 = vld [vmem:[#allocation4 + $0x18] sm:$0xff] }
 0x1e6   : > { %v714_v52 = vpop.permute.xlu1 %713 }
 0x1e7   : > { %1401 = vpow2.f32 %v727_v51  ;;  %v723_v53 = vsub.f32 %v590_v19, %v714_v52 }
 0x1e9   : > { %v729_v54 = vmul.f32 1.442695, %v723_v53 }
 0x1ea   : > { %v719_v55 = vpop.permute.xlu1 %718 }
 0x1eb   : > { %1403 = vpow2.f32 %v729_v54  ;;  %v724_v56 = vsub.f32 %v666_v23, %v719_v55  ;;  %v736_v23 = vld [vmem:[#allocation3 + $0x18] sm:$0xff] }
 0x1ed   : > { %v731_v57 = vmul.f32 1.442695, %v724_v56 }
 0x1ef   : > { %1405 = vpow2.f32 %v731_v57 }
 0x1f0   : > { %v1400_v59 = vpop.eup %1399  ;;  %1407 = vpow2.f32 %v695_v3 }
 0x1f1   : > { %1352 = vmatmul.mubr.msk.f32.vlgmr.msra.gmra.mxu0 %vm350_vm0, %v1400_v59  ;;  %v741_v60 = vsel %vm350_vm0, %v1400_v59, 0.0  ;;  %1409 = vpow2.f32 %v693_v5 }
 0x1f2   : > { %742 = vadd.xlane.f32.xlu1 %v741_v60  ;;  %1360 = vmatpush3.msra.mxu0 %v792_v58  ;;  %v764_v58 = vld [vmem:[#allocation4 + $0x10] sm:$0xff] }
 0x1f3   : > { %1361 = vmatprep.mubr.msk.f32.mxu0 %vm1448_vm1, %v1447_v0 }
 0x1f4   : > { %v1402_v62 = vpop.eup %1401 }
 0x1f5   : > { %1357 = vmatmul.mubr.msk.f32.vlgmr.msra.gmra.mxu1 %vm350_vm0, %v1402_v62  ;;  %v744_v63 = vsel %vm350_vm0, %v1402_v62, 0.0 }
 0x1f6   : > { %745 = vadd.xlane.f32.xlu0 %v744_v63  ;;  %1365 = vmatpush3.msra.mxu1 %v793_v61 }
 0x1f7   : > { %1366 = vmatprep.mubr.msk.f32.mxu1 %vm1448_vm1, %v1447_v0  ;;  %v697_v0 = vmul.f32 1.442695, %v691_v40 }
 0x1f8   : > { %v1404_v1 = vpop.eup %1403 }
 0x1f9   : > { %1362 = vmatmul.mubr.msk.f32.vlgmr.msra.gmra.mxu0 %vm350_vm0, %v1404_v1  ;;  %v747_v2 = vsel %vm350_vm0, %v1404_v1, 0.0  ;;  %1411 = vpow2.f32 %v697_v0 }
 0x1fa   : > { %748 = vadd.xlane.f32.xlu1 %v747_v2  ;;  %1413 = vpow2.f32 %v699_v9 }
 0x1fc   : > { %v1406_v4 = vpop.eup %1405 }
 0x1fd   : > { %1367 = vmatmul.mubr.msk.f32.vlgmr.msra.gmra.mxu1 %vm350_vm0, %v1406_v4  ;;  %v750_v6 = vsel %vm350_vm0, %v1406_v4, 0.0  ;;  %v1408_v7 = vpop.eup %1407 }
 0x1fe   : > { %751 = vadd.xlane.f32.xlu1 %v750_v6  ;;  %v1410_v8 = vpop.eup %1409  ;;  %v738_v15 = vmul.f32 %v1408_v7, %v734_v13 }
 0x1ff   : > { %v737_v11 = vmul.f32 %v1410_v8, %v733_v10 }
 0x206   : > { %v1412_v16 = vpop.eup %1411 }
 0x207   : > { %v739_v20 = vmul.f32 %v1412_v16, %v735_v18  ;;  %v1414_v21 = vpop.eup %1413 }
 0x208   : > { %v740_v26 = vmul.f32 %v1414_v21, %v736_v23 }
 0x20c   : > { %773 = vperm.xlu0 %1397, %v1408_v7  }
 0x20f   : > { %768 = vperm.xlu1 %1398, %v1410_v8  }
 0x27b   : > { %v743_v12 = vpop.xlane.xlu1 %742 }
 0x27c   : > { %v753_v14 = vadd.f32 %v743_v12, %v737_v11 }
 0x27e   : > { %758 = vst.msk [vmem:[#allocation3] sm:$0xff] %vm341_vm2, %v753_v14 }
 0x27f   : > { %v746_v17 = vpop.xlane.xlu0 %745 }
 0x280   : > { %v754_v19 = vadd.f32 %v746_v17, %v738_v15 }
 0x282   : > { %759 = vst.msk [vmem:[#allocation3 + $0x8] sm:$0xff] %vm341_vm2, %v754_v19 }
 0x283   : > { %v749_v22 = vpop.xlane.xlu1 %748 }
 0x284   : > { %v755_v24 = vadd.f32 %v749_v22, %v739_v20 }
 0x285   : > { %v1105_v25 = vld [vmem:[#allocation3] sm:$0xff] }
 0x286   : > { %760 = vst.msk [vmem:[#allocation3 + $0x10] sm:$0xff] %vm341_vm2, %v755_v24  ;;  %1111 = vperm.xlu1 %1398, %v1105_v25  }
 0x287   : > { %v752_v27 = vpop.xlane.xlu1 %751  ;;  %v774_v36 = vpop.permute.xlu0 %773 }
 0x288   : > { %v756_v28 = vadd.f32 %v752_v27, %v740_v26  ;;  %v787_v40 = vmul.f32 %v774_v36, %v763_v35 }
 0x289   : > { %v1106_v29 = vld [vmem:[#allocation3 + $0x8] sm:$0xff] }
 0x28a   : > { %761 = vst.msk [vmem:[#allocation3 + $0x18] sm:$0xff] %vm341_vm2, %v756_v28  ;;  %1116 = vperm.xlu0 %1397, %v1106_v29  }
 0x28b   : > { %v769_v33 = vpop.permute.xlu1 %768 }
 0x28c   : > { %v786_v34 = vmul.f32 %v769_v33, %v762_v32 }
 0x28d   : > { %v1107_v30 = vld [vmem:[#allocation3 + $0x10] sm:$0xff] }
 0x28e   : > { %783 = vperm.xlu0 %1397, %v1414_v21   ;;  %1121 = vperm.xlu1 %1398, %v1107_v30  }
 0x291   : > { %v1108_v31 = vld [vmem:[#allocation3 + $0x18] sm:$0xff] }
 0x292   : > { %1126 = vperm.xlu1 %1398, %v1108_v31  }
 0x296   : > { %778 = vperm.xlu1 %1398, %v1412_v16  }
 0x2b1   : > { %v863_v37 = vpop.f32.mrf.mxu0 }
 0x2b2   : > { %v1086_v38 = vadd.f32 %v863_v37, %v786_v34 }
 0x2b3   : > { %v1353_v39 = vpop.f32.mrf.mxu0 }
 0x2b4   : > { %1090 = vst.msk [vmem:[#allocation4] sm:$0xff] %vm350_vm0, %v1086_v38 }
 0x2b5   : > { %v936_v41 = vpop.f32.mrf.mxu1 }
 0x2b6   : > { %v1087_v42 = vadd.f32 %v936_v41, %v787_v40 }
 0x2b7   : > { %v1358_v43 = vpop.f32.mrf.mxu1 }
 0x2b8   : > { %1091 = vst.msk [vmem:[#allocation4 + $0x8] sm:$0xff] %vm350_vm0, %v1087_v42 }
 0x2b9   : > { %v1009_v44 = vpop.f32.mrf.mxu0 }
 0x2bb   : > { %v1363_v45 = vpop.f32.mrf.mxu0  ;;  %v1101_v57 = vld [vmem:[#allocation4] sm:$0xff] }
 0x2bd   : > { %v1082_v46 = vpop.f32.mrf.mxu1 }
 0x2bf   : > { %v1368_v47 = vpop.f32.mrf.mxu1  ;;  %v1102_v63 = vld [vmem:[#allocation4 + $0x8] sm:$0xff] }
 0x301   : > { %v1112_v48 = vpop.permute.xlu1 %1111 }
 0x302   : > { %1415 = vrcp.f32 %v1112_v48 }
 0x305   : > { %v1117_v49 = vpop.permute.xlu0 %1116 }
 0x306   : > { %1417 = vrcp.f32 %v1117_v49 }
 0x309   : > { %v784_v51 = vpop.permute.xlu0 %783  ;;  %v1122_v52 = vpop.permute.xlu1 %1121 }
 0x30a   : > { %v789_v53 = vmul.f32 %v784_v51, %v765_v50 }
 0x30c   : > { %v1089_v54 = vadd.f32 %v1082_v46, %v789_v53 }
 0x30d   : > { %v1127_v55 = vpop.permute.xlu1 %1126 }
 0x30e   : > { %1093 = vst.msk [vmem:[#allocation4 + $0x18] sm:$0xff] %vm350_vm0, %v1089_v54  ;;  %1419 = vrcp.f32 %v1127_v55 }
 0x30f   : > { %v1416_v56 = vpop.eup %1415  ;;  %1421 = vrcp.f32 %v1122_v52 }
 0x310   : > { %v1130_v59 = vmul.f32 %v1416_v56, %v1101_v57 }
 0x311   : > { %v779_v60 = vpop.permute.xlu1 %778 }
 0x312   : > { %1137 = vst.msk [vmem:[%s336_s9] sm:$0xff] %vm350_vm0, %v1130_v59  ;;  %v788_v61 = vmul.f32 %v779_v60, %v764_v58 }
 0x313   : > { %v1418_v62 = vpop.eup %1417 }
 0x314   : > { %v1132_v1 = vmul.f32 %v1418_v62, %v1102_v63  ;;  %v1088_v2 = vadd.f32 %v1009_v44, %v788_v61 }
 0x315   : > { %v1104_v4 = vld [vmem:[#allocation4 + $0x18] sm:$0xff] }
 0x316   : > { %1138 = vst.msk [vmem:[%s336_s9 + $0x8] sm:$0xff] %vm350_vm0, %v1132_v1  ;;  %1092 = vst.msk [vmem:[#allocation4 + $0x10] sm:$0xff] %vm350_vm0, %v1088_v2 }
 0x31b   : > { %v1420_v3 = vpop.eup %1419 }
 0x31c   : > { %v1136_v5 = vmul.f32 %v1420_v3, %v1104_v4  ;;  %v1422_v6 = vpop.eup %1421 }
 0x31d   : > { %v1103_v7 = vld [vmem:[#allocation4 + $0x10] sm:$0xff] }
 0x31e   : > { %1140 = vst.msk [vmem:[%s336_s9 + $0x18] sm:$0xff] %vm350_vm0, %v1136_v5  ;;  %v1134_v8 = vmul.f32 %v1422_v6, %v1103_v7 }
 0x320   : > { %1139 = vst.msk [vmem:[%s336_s9 + $0x10] sm:$0xff] %vm350_vm0, %v1134_v8 }
 0x321 PF: > { %s14_s17 = sadd.s32 1, %s1445_s17   ;;  %s1641_s15 = smov %s1441_s16 }
 0x322   : > { %p11_p5 = scmp.ge.s32.totalorder %s14_s17, 4   ;;  %s1642_s16 = smov %s1644_s18 }
 0x324   :  { %13 = sbr.rel (!%p11_p5) target bundleno = 2 (0x2), region = 83 }

</bundles_post_ra>
